<compile_context>
chip_gen: v7x
topology: tpu7x:2x2x1
jax: 0.10.0
libtpu: 0.0.40
codegen_flags: <defaults>
</compile_context>

<pallas_src>
import functools

import jax
import jax.numpy as jnp
from jax.experimental import pallas as pl
from jax.experimental.pallas import tpu as pltpu


def _round_up(x, m):
    return ((x + m - 1) // m) * m


def _soft_target_kernel(s_ref, t_ref, o_ref, acc_ref, *, temperature,
                        batch_size, tile_n):
    i = pl.program_id(0)

    # Init resident accumulator on the first grid step.
    @pl.when(i == 0)
    def _():
        acc_ref[...] = jnp.zeros_like(acc_ref)

    inv_t = 1.0 / temperature
    s = s_ref[...].astype(jnp.float32) * inv_t
    t = t_ref[...].astype(jnp.float32) * inv_t

    # Mask tail rows of the last (possibly partial) tile: padded rows are set
    # to 0 so both softmaxes are uniform and their KL contribution is exactly 0.
    row_ids = i * tile_n + jax.lax.broadcasted_iota(jnp.int32, s.shape, 0)
    valid = row_ids < batch_size
    s = jnp.where(valid, s, 0.0)
    t = jnp.where(valid, t, 0.0)

    # Student log-softmax over classes (axis=1).
    s_max = jnp.max(s, axis=1, keepdims=True)
    s_shift = s - s_max
    s_lse = jnp.log(jnp.sum(jnp.exp(s_shift), axis=1, keepdims=True))
    logp_s = s_shift - s_lse

    # Teacher softmax / log-softmax with a single full-tile exp.
    t_max = jnp.max(t, axis=1, keepdims=True)
    t_shift = t - t_max
    e_t = jnp.exp(t_shift)
    denom = jnp.sum(e_t, axis=1, keepdims=True)
    inv_denom = 1.0 / denom                 # exact divide on (tile_n, 1) only
    p_t = e_t * inv_denom
    logp_t = t_shift - jnp.log(denom)

    # Pointwise KL terms; re-mask for robustness (padded rows are already 0).
    kl = jnp.where(valid, p_t * (logp_t - logp_s), 0.0)

    acc_ref[...] = acc_ref[...] + jnp.sum(kl)

    # Finalize on the last grid step: batchmean reduction, then * T^2.
    @pl.when(i == pl.num_programs(0) - 1)
    def _():
        scale = (temperature * temperature) / float(batch_size)
        o_ref[...] = acc_ref[...] * scale


def soft_target_loss(out_s, out_t, T, *, tile_n=None):
    """KD soft-target loss. out_s, out_t: [N, C] logits (f32 or bf16).

    Returns an f32 scalar. bf16 inputs are supported and preferred for large
    shapes (HBM-bandwidth bound); math is done in f32 in-kernel.
    """
    assert out_s.shape == out_t.shape and out_s.ndim == 2
    n, c = out_s.shape
    itemsize = jnp.dtype(out_s.dtype).itemsize

    if tile_n is None:
        # Working set ~ 2 inputs x 2 pipeline buffers x tile_n x c x itemsize
        # plus a few f32 full-tile temporaries. Keep it under ~40 MiB so the
        # kernel fits v7x's 64 MiB physical VMEM with headroom (v5e/v6e have
        # 128 MiB, so the same tile is conservative there).
        budget = 40 * 1024 * 1024
        per_row = c * (4 * itemsize + 16)
        tile_n = int(max(8, min(1024, budget // per_row)))
        tile_n = max(8, (tile_n // 8) * 8)
        # NOTE: for vocab-scale C (32k-128k) a class-tiled online-softmax
        # variant would be needed instead of shrinking tile_n further.
    tile_n = int(min(tile_n, _round_up(n, 8)))

    grid = pl.cdiv(n, tile_n)
    kernel = functools.partial(
        _soft_target_kernel,
        temperature=float(T),
        batch_size=n,
        tile_n=tile_n,
    )

    cost = pl.CostEstimate(
        flops=16 * n * c,
        transcendentals=2 * n * c,
        bytes_accessed=2 * n * c * itemsize + 4,
    )

    out = pl.pallas_call(
        kernel,
        out_shape=jax.ShapeDtypeStruct((1, 1), jnp.float32),
        grid_spec=pltpu.PrefetchScalarGridSpec(
            num_scalar_prefetch=0,
            grid=(grid,),
            in_specs=[
                pl.BlockSpec((tile_n, c), lambda i: (i, 0)),
                pl.BlockSpec((tile_n, c), lambda i: (i, 0)),
            ],
            out_specs=pl.BlockSpec((1, 1), lambda i: (0, 0)),
            scratch_shapes=[pltpu.VMEM((1, 1), jnp.float32)],
        ),
        compiler_params=pltpu.CompilerParams(
            dimension_semantics=("arbitrary",),
            vmem_limit_bytes=48 * 1024 * 1024,
        ),
        cost_estimate=cost,
    )(out_s, out_t)
    return out[0, 0]


def _reference(out_s, out_t, T):
    # Pure-JAX reference mirroring F.kl_div(log_softmax, softmax, 'batchmean')*T*T
    s = out_s.astype(jnp.float32) / T
    t = out_t.astype(jnp.float32) / T
    logp_s = jax.nn.log_softmax(s, axis=1)
    logp_t = jax.nn.log_softmax(t, axis=1)
    p_t = jnp.exp(logp_t)
    return jnp.sum(p_t * (logp_t - logp_s)) / out_s.shape[0] * T * T


if __name__ == "__main__":
    key = jax.random.PRNGKey(0)
    k_s, k_t = jax.random.split(key)

    # Small demo consistent with the module: batch of 8 samples, 32 classes.
    N, C = 8, 32
    T = 4.0
    out_s = jax.random.normal(k_s, (N, C), dtype=jnp.float32)
    out_t = jax.random.normal(k_t, (N, C), dtype=jnp.float32)

    loss = soft_target_loss(out_s, out_t, T)
    loss = jax.block_until_ready(loss)
    ref = _reference(out_s, out_t, T)
    assert jnp.allclose(loss, ref, rtol=1e-5, atol=1e-5), (loss, ref)

    # Second check exercising the tiled path (grid > 1) and tail-row masking
    # (N not a multiple of the tile).
    N2, C2 = 200, 256
    k_s2, k_t2 = jax.random.split(k_t)
    out_s2 = jax.random.normal(k_s2, (N2, C2), dtype=jnp.float32)
    out_t2 = jax.random.normal(k_t2, (N2, C2), dtype=jnp.float32)
    loss2 = soft_target_loss(out_s2, out_t2, T, tile_n=64)
    loss2 = jax.block_until_ready(loss2)
    ref2 = _reference(out_s2, out_t2, T)
    assert jnp.allclose(loss2, ref2, rtol=1e-5, atol=1e-5), (loss2, ref2)

    print("KERNEL_OK")
</pallas_src>

<mosaic_0001>
module attributes {stable_mosaic.version = 11 : i64} {
  func.func @_soft_target_kernel(%arg0: i32, %arg1: memref<8x32xf32, #tpu.memory_space<vmem>>, %arg2: memref<8x32xf32, #tpu.memory_space<vmem>>, %arg3: memref<1x1xf32, #tpu.memory_space<vmem>>, %arg4: memref<1x1xf32, #tpu.memory_space<vmem>>) attributes {dimension_semantics = [#tpu.dimension_semantics<arbitrary>], iteration_bounds = array<i64: 1>, scalar_prefetch = 0 : i64, scratch_operands = 1 : i64, tpu.core_type = #tpu.core_type<tc>, window_params = [{transform_indices = @transform_0, window_bounds = array<i64: 8, 32>}, {transform_indices = @transform_1, window_bounds = array<i64: 8, 32>}, {pipeline_mode = #tpu.pipeline_mode<synchronous>, transform_indices = @transform_2, window_bounds = array<i64: 1, 1>}]} {
    %c0_i32 = arith.constant 0 : i32
    %0 = arith.cmpi eq, %arg0, %c0_i32 : i32
    %1 = arith.extui %0 : i1 to i32
    %c0_i32_0 = arith.constant 0 : i32
    %2 = arith.cmpi ne, %1, %c0_i32_0 : i32
    scf.if %2 {
      %cst_21 = arith.constant 0.000000e+00 : f32
      %58 = vector.broadcast %cst_21 : f32 to vector<1x1xf32>
      %c0_22 = arith.constant 0 : index
      %c0_23 = arith.constant 0 : index
      %59 = vector.load %arg4[%c0_22, %c0_23] : memref<1x1xf32, #tpu.memory_space<vmem>>, vector<1x1xf32>
      tpu.vector_store %arg4[%c0_22, %c0_23], %58 {strides = array<i32>} : memref<1x1xf32, #tpu.memory_space<vmem>>, vector<1x1xf32>,
    } else {
    }
    %c0 = arith.constant 0 : index
    %c0_1 = arith.constant 0 : index
    %3 = vector.load %arg1[%c0, %c0_1] : memref<8x32xf32, #tpu.memory_space<vmem>>, vector<8x32xf32>
    %cst = arith.constant 2.500000e-01 : f32
    %4 = vector.broadcast %cst : f32 to vector<8x32xf32>
    %5 = arith.mulf %3, %4 : vector<8x32xf32>
    %c0_2 = arith.constant 0 : index
    %c0_3 = arith.constant 0 : index
    %6 = vector.load %arg2[%c0_2, %c0_3] : memref<8x32xf32, #tpu.memory_space<vmem>>, vector<8x32xf32>
    %cst_4 = arith.constant 2.500000e-01 : f32
    %7 = vector.broadcast %cst_4 : f32 to vector<8x32xf32>
    %8 = arith.mulf %6, %7 : vector<8x32xf32>
    %c8_i32 = arith.constant 8 : i32
    %9 = arith.muli %arg0, %c8_i32 : i32
    %10 = tpu.iota {dimensions = array<i32: 0>} : vector<8x32xi32>
    %11 = vector.broadcast %9 : i32 to vector<8x32xi32>
    %12 = arith.addi %11, %10 : vector<8x32xi32>
    %c8_i32_5 = arith.constant 8 : i32
    %13 = vector.broadcast %c8_i32_5 : i32 to vector<8x32xi32>
    %14 = arith.cmpi slt, %12, %13 : vector<8x32xi32>
    %cst_6 = arith.constant 0.000000e+00 : f32
    %15 = vector.broadcast %cst_6 : f32 to vector<8x32xf32>
    %16 = arith.select %14, %5, %15 : vector<8x32xi1>, vector<8x32xf32>
    %cst_7 = arith.constant 0.000000e+00 : f32
    %17 = vector.broadcast %cst_7 : f32 to vector<8x32xf32>
    %18 = arith.select %14, %8, %17 : vector<8x32xi1>, vector<8x32xf32>
    %cst_8 = arith.constant dense<0xFF800000> : vector<8xf32>
    %19 = vector.multi_reduction <maximumf>, %16, %cst_8 [1] : vector<8x32xf32> to vector<8xf32>
    %20 = vector.shape_cast %19 : vector<8xf32> to vector<8x1xf32>
    %21 = vector.broadcast %20 : vector<8x1xf32> to vector<8x32xf32>
    %22 = arith.subf %16, %21 : vector<8x32xf32>
    %23 = math.exp %22 : vector<8x32xf32>
    %cst_9 = arith.constant dense<0.000000e+00> : vector<8xf32>
    %24 = vector.multi_reduction <add>, %23, %cst_9 [1] : vector<8x32xf32> to vector<8xf32>
    %25 = vector.shape_cast %24 : vector<8xf32> to vector<8x1xf32>
    %26 = math.log %25 : vector<8x1xf32>
    %27 = vector.broadcast %26 : vector<8x1xf32> to vector<8x32xf32>
    %28 = arith.subf %22, %27 : vector<8x32xf32>
    %cst_10 = arith.constant dense<0xFF800000> : vector<8xf32>
    %29 = vector.multi_reduction <maximumf>, %18, %cst_10 [1] : vector<8x32xf32> to vector<8xf32>
    %30 = vector.shape_cast %29 : vector<8xf32> to vector<8x1xf32>
    %31 = vector.broadcast %30 : vector<8x1xf32> to vector<8x32xf32>
    %32 = arith.subf %18, %31 : vector<8x32xf32>
    %33 = math.exp %32 : vector<8x32xf32>
    %cst_11 = arith.constant dense<0.000000e+00> : vector<8xf32>
    %34 = vector.multi_reduction <add>, %33, %cst_11 [1] : vector<8x32xf32> to vector<8xf32>
    %35 = vector.shape_cast %34 : vector<8xf32> to vector<8x1xf32>
    %cst_12 = arith.constant 1.000000e+00 : f32
    %36 = vector.broadcast %cst_12 : f32 to vector<8x1xf32>
    %37 = arith.divf %36, %35 : vector<8x1xf32>
    %38 = vector.broadcast %37 : vector<8x1xf32> to vector<8x32xf32>
    %39 = arith.mulf %33, %38 : vector<8x32xf32>
    %40 = math.log %35 : vector<8x1xf32>
    %41 = vector.broadcast %40 : vector<8x1xf32> to vector<8x32xf32>
    %42 = arith.subf %32, %41 : vector<8x32xf32>
    %43 = arith.subf %42, %28 : vector<8x32xf32>
    %44 = arith.mulf %39, %43 : vector<8x32xf32>
    %cst_13 = arith.constant 0.000000e+00 : f32
    %45 = vector.broadcast %cst_13 : f32 to vector<8x32xf32>
    %46 = arith.select %14, %44, %45 : vector<8x32xi1>, vector<8x32xf32>
    %c0_14 = arith.constant 0 : index
    %c0_15 = arith.constant 0 : index
    %47 = vector.load %arg4[%c0_14, %c0_15] : memref<1x1xf32, #tpu.memory_space<vmem>>, vector<1x1xf32>
    %48 = vector.shape_cast %46 : vector<8x32xf32> to vector<1x8x32xf32>
    %cst_16 = arith.constant dense<0.000000e+00> : vector<1xf32>
    %49 = vector.multi_reduction <add>, %48, %cst_16 [1, 2] : vector<1x8x32xf32> to vector<1xf32>
    %50 = vector.shape_cast %49 : vector<1xf32> to vector<1x1x1xf32>
    %51 = vector.extract %50[0, 0, 0] : f32 from vector<1x1x1xf32>
    %52 = vector.broadcast %51 : f32 to vector<1x1xf32>
    %53 = arith.addf %47, %52 : vector<1x1xf32>
    %c0_17 = arith.constant 0 : index
    %c0_18 = arith.constant 0 : index
    %54 = vector.load %arg4[%c0_17, %c0_18] : memref<1x1xf32, #tpu.memory_space<vmem>>, vector<1x1xf32>
    tpu.vector_store %arg4[%c0_17, %c0_18], %53 {strides = array<i32>} : memref<1x1xf32, #tpu.memory_space<vmem>>, vector<1x1xf32>,
    %c0_i32_19 = arith.constant 0 : i32
    %55 = arith.cmpi eq, %arg0, %c0_i32_19 : i32
    %56 = arith.extui %55 : i1 to i32
    %c0_i32_20 = arith.constant 0 : i32
    %57 = arith.cmpi ne, %56, %c0_i32_20 : i32
    scf.if %57 {
      %c0_21 = arith.constant 0 : index
      %c0_22 = arith.constant 0 : index
      %58 = vector.load %arg4[%c0_21, %c0_22] : memref<1x1xf32, #tpu.memory_space<vmem>>, vector<1x1xf32>
      %cst_23 = arith.constant 2.000000e+00 : f32
      %59 = vector.broadcast %cst_23 : f32 to vector<1x1xf32>
      %60 = arith.mulf %58, %59 : vector<1x1xf32>
      %c0_24 = arith.constant 0 : index
      %c0_25 = arith.constant 0 : index
      %61 = vector.load %arg3[%c0_24, %c0_25] : memref<1x1xf32, #tpu.memory_space<vmem>>, vector<1x1xf32>
      tpu.vector_store %arg3[%c0_24, %c0_25], %60 {strides = array<i32>} : memref<1x1xf32, #tpu.memory_space<vmem>>, vector<1x1xf32>,
    } else {
    }
    return
  }
  func.func @transform_0(%arg0: i32) -> (i32, i32) {
    %c0_i32 = arith.constant 0 : i32
    %c0_i32_0 = arith.constant 0 : i32
    return %arg0, %c0_i32 : i32, i32
  }
  func.func @transform_1(%arg0: i32) -> (i32, i32) {
    %c0_i32 = arith.constant 0 : i32
    %c0_i32_0 = arith.constant 0 : i32
    return %arg0, %c0_i32 : i32, i32
  }
  func.func @transform_2(%arg0: i32) -> (i32, i32) {
    %c0_i32 = arith.constant 0 : i32
    %c0_i32_0 = arith.constant 0 : i32
    %c0_i32_1 = arith.constant 0 : i32
    return %c0_i32, %c0_i32_0 : i32, i32
  }
}

</mosaic_0001>

<bundles_post_ra>
// kernel: tpu_custom_call.1
= control target key start
LH: loop header
LB: loop body
LE: loop exit
PB: predicated region body
PF: predicated region fallthrough
CT: control target
= control target key end

     0   :  { %7 = vsyncpa [#allocation4], 0  ;;  %s273_s0 = inlined_call_operand.hbm [shape: f32[8,32], index: 0, kind: input, shape index: {}]   ;;  %s274_s1 = inlined_call_operand.hbm [shape: f32[8,32], index: 1, kind: input, shape index: {}]   ;;  %s275_s2 = inlined_call_operand.hbm [shape: f32[1,1], index: 2, kind: output, shape index: {}]  }
   0x1   :  { %8 = vsyncpa [#allocation7], 0 }
   0x2   :  { %9 = vsyncpa [#allocation5], 0  ;;  %s210_s9 = smov [#allocation3]   ;;  %s211_s11 = smov [#allocation6]  }
   0x3   :  { %s16_s10 = sshll.u32 %s210_s9, 4  ;;  %s26_s12 = sshll.u32 %s211_s11, 4  ;;  %s17_s10 = int_to_ptr.vmem [resolvable:$true] %s16_s10  ;;  %s27_s12 = int_to_ptr.vmem [resolvable:$true] %s26_s12 }
   0x4   :  { %s138_s15 = scalar_lea.hbm %s273_s0, 128 }
   0x5   :  { %p139_p0 = scmp.ne.s32.totalorder %s273_s0, %s138_s15  ;;  %p142_p1 = scmp.lt.u32.totalorder %s138_s15, %s273_s0 }
   0x7   :  { %p144_p2 = pnand %p142_p1, %p139_p0 }
   0x9   :  { %147 = shalt.err (!%p144_p2)
}
   0xa   :  { %s148_s20 = scalar_lea.vmem %s17_s10, 128  ;;  %p153_p4 = scmp.lt.s32.totalorder %s17_s10, %s17_s10 }
   0xb   :  { %p149_p3 = scmp.ne.s32.totalorder %s17_s10, %s148_s20  ;;  %p154_p5 = scmp.lt.s32.totalorder %s148_s20, %s148_s20 }
   0xd   :  { %p155_p6 = por %p154_p5, %p153_p4 }
   0xf   :  { %p156_p7 = pnand %p155_p6, %p149_p3 }
  0x11   :  { %159 = shalt.err (!%p156_p7)
}
  0x12   :  { %19 = dma.hbm_to_vmem [thread:$0]  %s273_s0, 128, %s17_s10, [#allocation4]  }
  0x13   :  { %s160_s25 = scalar_lea.hbm %s274_s1, 128 }
  0x14   :  { %p161_p8 = scmp.ne.s32.totalorder %s274_s1, %s160_s25  ;;  %p164_p9 = scmp.lt.u32.totalorder %s160_s25, %s274_s1 }
  0x16   :  { %p166_p10 = pnand %p164_p9, %p161_p8 }
  0x18   :  { %169 = shalt.err (!%p166_p10)
}
  0x19   :  { %s170_s30 = scalar_lea.vmem %s27_s12, 128  ;;  %p175_p12 = scmp.lt.s32.totalorder %s27_s12, %s27_s12 }
  0x1a   :  { %p171_p11 = scmp.ne.s32.totalorder %s27_s12, %s170_s30  ;;  %p176_p13 = scmp.lt.s32.totalorder %s170_s30, %s170_s30 }
  0x1c   :  { %p177_p0 = por %p176_p13, %p175_p12 }
  0x1e   :  { %p178_p1 = pnand %p177_p0, %p171_p11 }
  0x20   :  { %181 = shalt.err (!%p178_p1)
}
  0x21   :  { %29 = dma.hbm_to_vmem [thread:$0]  %s274_s1, 128, %s27_s12, [#allocation7]  }
  0x22   :  { %204 = dma.done.wait [#allocation4], 128  }
  0x23   :  { %205 = vsyncadd [#allocation4], 4294967168 }
  0x24   :  { %206 = dma.done.wait [#allocation7], 128  }
  0x25   :  { %207 = vsyncadd [#allocation7], 4294967168  ;;  %v42_v0 = vld [vmem:[#allocation3] sm:$0xff]  ;;  %vm54_vm0 = vcmask 261120   ;;  %v44_v1 = vld [vmem:[#allocation6] sm:$0xff]  ;;  %vm40_vm1 = vcmask 0  }
  0x26   :  { %v43_v2 = vmul.f32 0.25, %v42_v0  ;;  %v45_v3 = vmul.f32 0.25, %v44_v1  ;;  %v212_v29 = vmov 0.0   ;;  %s213_s4 = smov [#allocation8]  }
  0x27   :  { %41 = vst.msk [vmem:[#allocation2] sm:$0x1] %vm40_vm1, %v212_v29  ;;  %s112_s5 = sshll.u32 %s213_s4, 4  ;;  %s113_s5 = int_to_ptr.vmem [resolvable:$true] %s112_s5 }
  0x28   :  { %v55_v4 = vsel %vm54_vm0, %v43_v2, -inf  ;;  %v67_v5 = vsel %vm54_vm0, %v45_v3, -inf  ;;  %s182_s6 = scalar_lea.vmem %s113_s5, 16  ;;  %s186_s7 = scalar_lea.vmem %s113_s5, 32 }
  0x29   :  { %56 = vmax.xlane.f32.xlu0 %v55_v4  ;;  %p183_p2 = scmp.ne.s32.totalorder %s113_s5, %s182_s6  ;;  %p187_p3 = scmp.lt.s32.totalorder %s113_s5, %s113_s5 }
  0x2a   :  { %p188_p4 = scmp.lt.s32.totalorder %s186_s7, %s182_s6 }
  0x2c   :  { %p189_p5 = por %p188_p4, %p187_p3 }
  0x2d   :  { %68 = vmax.xlane.f32.xlu0 %v67_v5 }
  0x2e   :  { %v85_v37 = vld [vmem:[#allocation2] sm:$0x1]  ;;  %p190_p6 = pnand %p189_p5, %p183_p2 }
  0xb6   :  { %v57_v6 = vpop.xlane.xlu0 %56 }
  0xb7   :  { %v58_v7 = vsub.f32 %v43_v2, %v57_v6 }
  0xb9   :  { %v59_v8 = vmul.f32 1.442695, %v58_v7 }
  0xba   :  { %v69_v9 = vpop.xlane.xlu0 %68 }
  0xbb   :  { %128 = vpow2.f32 %v59_v8  ;;  %v70_v10 = vsub.f32 %v45_v3, %v69_v9 }
  0xbd   :  { %v71_v11 = vmul.f32 1.442695, %v70_v10 }
  0xbf   :  { %130 = vpow2.f32 %v71_v11 }
  0xc5   :  { %v129_v12 = vpop.eup %128 }
  0xc6   :  { %v61_v13 = vsel %vm54_vm0, %v129_v12, 0.0 }
  0xc7   :  { %62 = vadd.xlane.f32.xlu1 %v61_v13 }
  0xc9   :  { %v131_v14 = vpop.eup %130 }
  0xca   :  { %v73_v15 = vsel %vm54_vm0, %v131_v14, 0.0 }
  0xcb   :  { %74 = vadd.xlane.f32.xlu1 %v73_v15 }
 0x154   :  { %v63_v16 = vpop.xlane.xlu1 %62 }
 0x155   :  { %132 = vlog2.f32 %v63_v16 }
 0x158   :  { %v75_v17 = vpop.xlane.xlu1 %74 }
 0x159   :  { %134 = vlog2.f32 %v75_v17 }
 0x15a   :  { %136 = vrcp.f32 %v75_v17 }
 0x15f   :  { %v133_v18 = vpop.eup %132 }
 0x160   :  { %v65_v19 = vmul.f32 0.6931472, %v133_v18 }
 0x162   :  { %v66_v23 = vsub.f32 %v58_v7, %v65_v19 }
 0x163   :  { %v135_v20 = vpop.eup %134 }
 0x164   :  { %v80_v21 = vmul.f32 0.6931472, %v135_v20  ;;  %v137_v22 = vpop.eup %136 }
 0x165   :  { %v78_v25 = vmul.f32 %v137_v22, %v131_v14 }
 0x166   :  { %v81_v24 = vsub.f32 %v70_v10, %v80_v21 }
 0x168   :  { %v82_v26 = vsub.f32 %v81_v24, %v66_v23 }
 0x16a   :  { %v83_v27 = vmul.f32 %v82_v26, %v78_v25 }
 0x16c   :  { %v86_v28 = vsel %vm54_vm0, %v83_v27, 0.0 }
 0x16d   :  { %87 = vadd.xlane.f32.xlu0 %v86_v28 }
 0x1fa   :  { %v88_v30 = vpop.xlane.xlu0 %87 }
 0x1fb   :  { %v89_v31 = vrot.slane %v88_v30, 4 }
 0x1fd   :  { %v90_v32 = vadd.f32 %v89_v31, %v88_v30 }
 0x1ff   :  { %v91_v33 = vrot.slane %v90_v32, 2 }
 0x201   :  { %v92_v34 = vadd.f32 %v91_v33, %v90_v32 }
 0x203   :  { %v93_v35 = vrot.slane %v92_v34, 1 }
 0x205   :  { %v94_v36 = vadd.f32 %v93_v35, %v92_v34 }
 0x207   :  { %122 = vpush %v94_v36 }
 0x238   :  { %s123_s1 = spop %122 }
 0x239   :  { %v96_v38 = vstv %s123_s1 }
 0x23a   :  { %v97_v39 = vadd.f32 %v96_v38, %v85_v37 }
 0x23c   :  { %99 = vst.msk [vmem:[#allocation2] sm:$0x1] %vm40_vm1, %v97_v39 }
 0x243   :  { %v103_v40 = vld [vmem:[#allocation2] sm:$0x1] }
 0x244   :  { %v104_v41 = vmul.f32 2.0, %v103_v40 }
 0x246   :  { %105 = vst.msk [vmem:[#allocation8] sm:$0x1] %vm40_vm1, %v104_v41 }
 0x247   :  { %193 = shalt.err (!%p190_p6)
}
 0x248   :  { %s194_s10 = scalar_lea.hbm %s275_s2, 16 }
 0x249   :  { %p195_p7 = scmp.ne.s32.totalorder %s275_s2, %s194_s10  ;;  %p198_p8 = scmp.lt.u32.totalorder %s194_s10, %s275_s2 }
 0x24b   :  { %p200_p9 = pnand %p198_p8, %p195_p7 }
 0x24d   :  { %203 = shalt.err (!%p200_p9)
}
 0x24e   :  { %115 = dma.vmem_to_hbm [thread:$0]  %s113_s5, 16, %s275_s2, [#allocation5]  }
 0x24f   :  { %208 = dma.done.wait [#allocation5], 16  }
 0x250   :  { %209 = vsyncadd [#allocation5], 4294967280 }
 0x251   :  { %119 = vsyncpa [#allocation4], 1 }
 0x252   :  { %120 = vsyncpa [#allocation7], 1 }
 0x253   :  { %121 = vsyncpa [#allocation5], 1 }

</bundles_post_ra>
